<compile_context>
chip_gen: v5e
topology: v5e:2x2
jax: 0.10.0
libtpu: 0.0.40
codegen_flags: <defaults>
</compile_context>

<pallas_src>
import functools

import jax
import jax.numpy as jnp
from jax.experimental import pallas as pl
from jax.experimental.pallas import tpu as pltpu

# ----------------------------- configuration --------------------------------
INR_C = 32                     # inr_c (feature channels)
MLP_LAYERS = 3                 # mlp_layers (docstring default) -> 2 decoder convs
USING_CASCADE = True           # exposure_using_cascade_embedding
EMBEDDING_METHOD = 'ADD'       # 'ADD' | 'MULTI'
IS_INR_NORMAL_FEATURE = True   # enables BatchNorm2d + exposure_prompt add
BN_EPS = 1e-5                  # torch.nn.BatchNorm2d default eps


# ----------------------------- Pallas kernel ---------------------------------
def _exposure_decoding_kernel(x_ref, lemb_ref, dec_w_ref, rgb_w_ref, bias_ref,
                              o_ref, *, num_dec_layers, cascade, method_add):
    """One (batch, spatial-tile) step: full decoder -> fused epilogue, in VMEM.

    Shapes per step (channels-first, spatial in lanes):
      x:      (C, TILE)    lemb:  (C, 1)
      dec_w:  (L, C, C)    rgb_w: (3, C)   bias: (3, 1)
      output: (3, TILE)
    """
    cdt = x_ref.dtype
    y = x_ref[0]                                           # (C, TILE)
    # Hoist the (C,1) -> (C,TILE) lane broadcast out of the layer loop.
    lemb_b = jnp.broadcast_to(lemb_ref[0], y.shape)        # (C, TILE)

    def conv_relu(layer_idx, v):
        v = jnp.dot(dec_w_ref[layer_idx], v, preferred_element_type=jnp.float32)
        return jnp.maximum(v, 0.0).astype(cdt)             # ReLU, back to compute dtype

    if cascade:
        for l in range(num_dec_layers):                    # static unroll (L is tiny)
            y = (y + lemb_b) if method_add else (y * lemb_b)
            y = conv_relu(l, y)
    else:
        y = y + lemb_b                                     # PyTorch non-cascade path always ADDs
        for l in range(num_dec_layers):
            y = conv_relu(l, y)

    # BN (eval mode) + exposure prompt are folded into rgb_w / bias by the
    # wrapper; epilogue is a single lane-dense matmul + per-sample bias add.
    out = jnp.dot(rgb_w_ref[...], y, preferred_element_type=jnp.float32)
    o_ref[0] = out + bias_ref[0]


# ----------------------------- wrapper ---------------------------------------
def _tile_cap():
    """Generation-tuned lane-tile cap (bigger on v6e; conservative v5e/v7x)."""
    try:
        kind = jax.devices()[0].device_kind.lower()
    except Exception:
        return 16384
    if 'v6' in kind:
        return 32768
    return 16384


def _choose_spatial_tile(hw_padded, cap):
    """Largest multiple-of-128 divisor of hw_padded that does not exceed cap."""
    if hw_padded <= cap:
        return hw_padded
    t = cap - (cap % 128)
    while t >= 128:
        if hw_padded % t == 0:
            return t
        t -= 128
    return 128  # hw_padded is a multiple of 128, so this always divides it


def exposure_decoding(x, light_emb, exposure_prompt, params, *,
                      cascade=USING_CASCADE, method=EMBEDDING_METHOD,
                      use_bn=IS_INR_NORMAL_FEATURE,
                      compute_dtype=jnp.bfloat16):
    """x: (B, C, H, W); light_emb / exposure_prompt: (B, C, 1, 1)."""
    B, C, H, W = x.shape
    HW = H * W
    L = int(params['dec_w'].shape[0])

    # Lane-dense spatial axis: zero-pad H*W to a multiple of 128; padded
    # columns produce garbage that is sliced off below.
    hw_pad = (-HW) % 128
    HWp = HW + hw_pad
    tile = _choose_spatial_tile(HWp, _tile_cap())
    n_s = HWp // tile

    x_f = x.reshape(B, C, HW).astype(compute_dtype)
    if hw_pad:
        x_f = jnp.pad(x_f, ((0, 0), (0, 0), (0, hw_pad)))

    lemb = light_emb.reshape(B, C, 1).astype(compute_dtype)
    eprompt = exposure_prompt.reshape(B, C, 1).astype(jnp.float32)

    rgb_w = params['rgb_w'].astype(jnp.float32)
    if use_bn:
        # TODO(synk): BatchNorm2d implemented in eval mode (folded running
        # stats); training-mode batch statistics would need a cross-batch pass.
        # Exact fold into the RGB projection:
        #   rgb_w @ (y*scale + shift + prompt)
        #     = (rgb_w*scale) @ y + rgb_w @ (shift + prompt)
        scale = params['bn_gamma'] * jax.lax.rsqrt(params['bn_var'] + BN_EPS)
        shift = params['bn_beta'] - params['bn_mean'] * scale
        rgb_w_eff = rgb_w * scale[None, :]
        bias = jnp.einsum('oc,bcx->box', rgb_w, shift[:, None] + eprompt)   # (B,3,1)
    else:
        rgb_w_eff = rgb_w
        bias = jnp.zeros((B, 3, 1), jnp.float32)

    dec_w = params['dec_w'].astype(compute_dtype)
    if L == 0:
        dec_w = jnp.zeros((1, C, C), compute_dtype)       # dummy block, never read
    Lb = int(dec_w.shape[0])
    rgb_w_eff = rgb_w_eff.astype(compute_dtype)

    # VMEM budget: only raise the scoped limit when the working set would
    # exceed the most restrictive default (v5e, 16 MiB); cap well under v7x.
    itemsize = jnp.dtype(compute_dtype).itemsize
    est = (2 * C * tile * itemsize            # x double-buffer
           + 2 * 3 * tile * 4                 # output double-buffer
           + 4 * C * tile * 4                 # live f32 intermediates (headroom)
           + 2 * (Lb * C * C + 3 * C) * itemsize
           + (1 << 20))
    cp_kwargs = dict(dimension_semantics=("parallel", "parallel"))
    if est > (16 << 20):
        cp_kwargs['vmem_limit_bytes'] = int(min(max(est, 32 << 20), 48 << 20))

    kernel = functools.partial(
        _exposure_decoding_kernel,
        num_dec_layers=L, cascade=cascade, method_add=(method == 'ADD'))

    out = pl.pallas_call(
        kernel,
        out_shape=jax.ShapeDtypeStruct((B, 3, HWp), jnp.float32),
        grid=(B, n_s),
        in_specs=[
            pl.BlockSpec((1, C, tile), lambda b, s: (b, 0, s)),   # x
            pl.BlockSpec((1, C, 1), lambda b, s: (b, 0, 0)),      # light_emb
            pl.BlockSpec((Lb, C, C), lambda b, s: (0, 0, 0)),     # decoder weights
            pl.BlockSpec((3, C), lambda b, s: (0, 0)),            # fused rgb weight
            pl.BlockSpec((1, 3, 1), lambda b, s: (b, 0, 0)),      # fused per-sample bias
        ],
        out_specs=pl.BlockSpec((1, 3, tile), lambda b, s: (b, 0, s)),
        compiler_params=pltpu.CompilerParams(**cp_kwargs),
    )(x_f, lemb, dec_w, rgb_w_eff, bias)

    if hw_pad:
        out = out[:, :, :HW]
    return out.reshape(B, 3, H, W)


# ----------------------------- pure-JAX reference -----------------------------
def exposure_decoding_ref(x, light_emb, exposure_prompt, params, *,
                          cascade, method, use_bn):
    def conv1x1(w, v):                                  # w: (out, in)
        return jnp.einsum('oi,bihw->bohw', w, v)

    y = x
    L = params['dec_w'].shape[0]
    if cascade:
        for l in range(L):
            y = (y + light_emb) if method == 'ADD' else (y * light_emb)
            y = jax.nn.relu(conv1x1(params['dec_w'][l], y))
    else:
        y = y + light_emb
        for l in range(L):
            y = jax.nn.relu(conv1x1(params['dec_w'][l], y))
    if use_bn:
        scale = params['bn_gamma'] * jax.lax.rsqrt(params['bn_var'] + BN_EPS)
        shift = params['bn_beta'] - params['bn_mean'] * scale
        y = y * scale[None, :, None, None] + shift[None, :, None, None]
        y = y + exposure_prompt
    return conv1x1(params['rgb_w'], y)


# ----------------------------- main -------------------------------------------
if __name__ == "__main__":
    key = jax.random.PRNGKey(0)
    k1, k2, k3, k4, k5 = jax.random.split(key, 5)

    B, C, H, W = 2, INR_C, 16, 16
    x = jax.random.normal(k1, (B, C, H, W), jnp.float32)
    light_emb = jax.random.normal(k2, (B, C, 1, 1), jnp.float32)
    exposure_prompt = jax.random.normal(k3, (B, C, 1, 1), jnp.float32)

    L = MLP_LAYERS - 1
    kw = jax.random.split(k4, L + 1)
    dec_w = jnp.stack(
        [0.2 * jax.random.normal(kw[l], (C, C), jnp.float32) for l in range(L)])
    rgb_w = 0.2 * jax.random.normal(kw[L], (3, C), jnp.float32)

    params = dict(
        dec_w=dec_w,
        rgb_w=rgb_w,
        bn_gamma=jnp.ones((C,), jnp.float32)
        + 0.1 * jax.random.normal(k5, (C,), jnp.float32),
        bn_beta=0.05 * jnp.ones((C,), jnp.float32),
        bn_mean=jnp.zeros((C,), jnp.float32),
        bn_var=jnp.ones((C,), jnp.float32),
    )

    y_ref = exposure_decoding_ref(
        x, light_emb, exposure_prompt, params,
        cascade=USING_CASCADE, method=EMBEDDING_METHOD,
        use_bn=IS_INR_NORMAL_FEATURE)

    # 1) Default fast path: bf16 compute, f32 MXU accumulation.
    fwd_bf16 = jax.jit(functools.partial(
        exposure_decoding, cascade=USING_CASCADE, method=EMBEDDING_METHOD,
        use_bn=IS_INR_NORMAL_FEATURE, compute_dtype=jnp.bfloat16))
    y_bf16 = fwd_bf16(x, light_emb, exposure_prompt, params)
    jax.block_until_ready(y_bf16)
    assert y_bf16.shape == (B, 3, H, W) and y_bf16.dtype == jnp.float32
    assert bool(jnp.all(jnp.isfinite(y_bf16)))
    rel_err = jnp.max(jnp.abs(y_bf16 - y_ref)) / (jnp.max(jnp.abs(y_ref)) + 1e-6)
    assert float(rel_err) < 5e-2, float(rel_err)

    # 2) f32 path: exact check against the pure-JAX reference.
    fwd_f32 = jax.jit(functools.partial(
        exposure_decoding, cascade=USING_CASCADE, method=EMBEDDING_METHOD,
        use_bn=IS_INR_NORMAL_FEATURE, compute_dtype=jnp.float32))
    y_f32 = fwd_f32(x, light_emb, exposure_prompt, params)
    jax.block_until_ready(y_f32)
    assert bool(jnp.allclose(y_f32, y_ref, atol=1e-4, rtol=1e-4))

    # 3) Non-128-aligned spatial size exercises the lane-padding path.
    H2, W2 = 13, 11
    x2 = jax.random.normal(k1, (B, C, H2, W2), jnp.float32)
    y2 = jax.jit(functools.partial(
        exposure_decoding, cascade=USING_CASCADE, method=EMBEDDING_METHOD,
        use_bn=IS_INR_NORMAL_FEATURE, compute_dtype=jnp.float32))(
        x2, light_emb, exposure_prompt, params)
    jax.block_until_ready(y2)
    y2_ref = exposure_decoding_ref(
        x2, light_emb, exposure_prompt, params,
        cascade=USING_CASCADE, method=EMBEDDING_METHOD,
        use_bn=IS_INR_NORMAL_FEATURE)
    assert bool(jnp.allclose(y2, y2_ref, atol=1e-4, rtol=1e-4))

    print("KERNEL_OK")
</pallas_src>

<mosaic_0001>
module attributes {stable_mosaic.version = 11 : i64} {
  func.func @_exposure_decoding_kernel(%arg0: i32, %arg1: i32, %arg2: memref<1x32x256xbf16, #tpu.memory_space<vmem>>, %arg3: memref<1x32x1xbf16, #tpu.memory_space<vmem>>, %arg4: memref<2x32x32xbf16, #tpu.memory_space<vmem>>, %arg5: memref<3x32xbf16, #tpu.memory_space<vmem>>, %arg6: memref<1x3x1xf32, #tpu.memory_space<vmem>>, %arg7: memref<1x3x256xf32, #tpu.memory_space<vmem>>) attributes {dimension_semantics = [#tpu.dimension_semantics<parallel>, #tpu.dimension_semantics<parallel>], iteration_bounds = array<i64: 2, 1>, scalar_prefetch = 0 : i64, scratch_operands = 0 : i64, tpu.core_type = #tpu.core_type<tc>, window_params = [{transform_indices = @transform_0, window_bounds = array<i64: 1, 32, 256>}, {transform_indices = @transform_1, window_bounds = array<i64: 1, 32, 1>}, {pipeline_mode = #tpu.pipeline_mode<synchronous>, transform_indices = @transform_2, window_bounds = array<i64: 2, 32, 32>}, {pipeline_mode = #tpu.pipeline_mode<synchronous>, transform_indices = @transform_3, window_bounds = array<i64: 3, 32>}, {transform_indices = @transform_4, window_bounds = array<i64: 1, 3, 1>}, {transform_indices = @transform_5, window_bounds = array<i64: 1, 3, 256>}]} {
    %c0 = arith.constant 0 : index
    %c0_0 = arith.constant 0 : index
    %c0_1 = arith.constant 0 : index
    %0 = vector.load %arg2[%c0, %c0_0, %c0_1] : memref<1x32x256xbf16, #tpu.memory_space<vmem>>, vector<1x32x256xbf16>
    %1 = vector.shape_cast %0 : vector<1x32x256xbf16> to vector<32x256xbf16>
    %c0_2 = arith.constant 0 : index
    %c0_3 = arith.constant 0 : index
    %c0_4 = arith.constant 0 : index
    %2 = vector.load %arg3[%c0_2, %c0_3, %c0_4] : memref<1x32x1xbf16, #tpu.memory_space<vmem>>, vector<1x32x1xbf16>
    %3 = vector.shape_cast %2 : vector<1x32x1xbf16> to vector<32x1xbf16>
    %4 = vector.shape_cast %3 : vector<32x1xbf16> to vector<32x1xbf16>
    %5 = vector.broadcast %4 : vector<32x1xbf16> to vector<32x256xbf16>
    %6 = arith.addf %1, %5 : vector<32x256xbf16>
    %c0_5 = arith.constant 0 : index
    %c0_6 = arith.constant 0 : index
    %c0_7 = arith.constant 0 : index
    %7 = vector.load %arg4[%c0_5, %c0_6, %c0_7] : memref<2x32x32xbf16, #tpu.memory_space<vmem>>, vector<1x32x32xbf16>
    %8 = vector.shape_cast %7 : vector<1x32x32xbf16> to vector<32x32xbf16>
    %cst = arith.constant dense<0.000000e+00> : vector<32x256xf32>
    %9 = tpu.matmul %8, %6, %cst {dimension_numbers = #tpu.dot_dimension_numbers<[1], [0], [0], [1], [0, 0, 1, 1], [], []>} : vector<32x32xbf16>, vector<32x256xbf16>, vector<32x256xf32> -> vector<32x256xf32>
    %cst_8 = arith.constant 0.000000e+00 : f32
    %10 = vector.broadcast %cst_8 : f32 to vector<32x256xf32>
    %11 = arith.maximumf %9, %10 : vector<32x256xf32>
    %12 = arith.truncf %11 : vector<32x256xf32> to vector<32x256xbf16>
    %13 = arith.addf %12, %5 : vector<32x256xbf16>
    %c1 = arith.constant 1 : index
    %c0_9 = arith.constant 0 : index
    %c0_10 = arith.constant 0 : index
    %14 = vector.load %arg4[%c1, %c0_9, %c0_10] : memref<2x32x32xbf16, #tpu.memory_space<vmem>>, vector<1x32x32xbf16>
    %15 = vector.shape_cast %14 : vector<1x32x32xbf16> to vector<32x32xbf16>
    %cst_11 = arith.constant dense<0.000000e+00> : vector<32x256xf32>
    %16 = tpu.matmul %15, %13, %cst_11 {dimension_numbers = #tpu.dot_dimension_numbers<[1], [0], [0], [1], [0, 0, 1, 1], [], []>} : vector<32x32xbf16>, vector<32x256xbf16>, vector<32x256xf32> -> vector<32x256xf32>
    %cst_12 = arith.constant 0.000000e+00 : f32
    %17 = vector.broadcast %cst_12 : f32 to vector<32x256xf32>
    %18 = arith.maximumf %16, %17 : vector<32x256xf32>
    %19 = arith.truncf %18 : vector<32x256xf32> to vector<32x256xbf16>
    %c0_13 = arith.constant 0 : index
    %c0_14 = arith.constant 0 : index
    %20 = vector.load %arg5[%c0_13, %c0_14] : memref<3x32xbf16, #tpu.memory_space<vmem>>, vector<3x32xbf16>
    %cst_15 = arith.constant dense<0.000000e+00> : vector<3x256xf32>
    %21 = tpu.matmul %20, %19, %cst_15 {dimension_numbers = #tpu.dot_dimension_numbers<[1], [0], [0], [1], [0, 0, 1, 1], [], []>} : vector<3x32xbf16>, vector<32x256xbf16>, vector<3x256xf32> -> vector<3x256xf32>
    %c0_16 = arith.constant 0 : index
    %c0_17 = arith.constant 0 : index
    %c0_18 = arith.constant 0 : index
    %22 = vector.load %arg6[%c0_16, %c0_17, %c0_18] : memref<1x3x1xf32, #tpu.memory_space<vmem>>, vector<1x3x1xf32>
    %23 = vector.shape_cast %22 : vector<1x3x1xf32> to vector<3x1xf32>
    %24 = vector.broadcast %23 : vector<3x1xf32> to vector<3x256xf32>
    %25 = arith.addf %21, %24 : vector<3x256xf32>
    %c0_19 = arith.constant 0 : index
    %c0_20 = arith.constant 0 : index
    %c0_21 = arith.constant 0 : index
    %26 = vector.load %arg7[%c0_19, %c0_20, %c0_21] : memref<1x3x256xf32, #tpu.memory_space<vmem>>, vector<1x3x256xf32>
    %27 = vector.shape_cast %26 : vector<1x3x256xf32> to vector<3x256xf32>
    %28 = vector.shape_cast %25 : vector<3x256xf32> to vector<1x3x256xf32>
    tpu.vector_store %arg7[%c0_19, %c0_20, %c0_21], %28 {strides = array<i32>} : memref<1x3x256xf32, #tpu.memory_space<vmem>>, vector<1x3x256xf32>,
    return
  }
  func.func @transform_0(%arg0: i32, %arg1: i32) -> (i32, i32, i32) {
    %c0_i32 = arith.constant 0 : i32
    %c0_i32_0 = arith.constant 0 : i32
    return %arg0, %c0_i32, %arg1 : i32, i32, i32
  }
  func.func @transform_1(%arg0: i32, %arg1: i32) -> (i32, i32, i32) {
    %c0_i32 = arith.constant 0 : i32
    %c0_i32_0 = arith.constant 0 : i32
    %c0_i32_1 = arith.constant 0 : i32
    return %arg0, %c0_i32, %c0_i32_0 : i32, i32, i32
  }
  func.func @transform_2(%arg0: i32, %arg1: i32) -> (i32, i32, i32) {
    %c0_i32 = arith.constant 0 : i32
    %c0_i32_0 = arith.constant 0 : i32
    %c0_i32_1 = arith.constant 0 : i32
    %c0_i32_2 = arith.constant 0 : i32
    return %c0_i32, %c0_i32_0, %c0_i32_1 : i32, i32, i32
  }
  func.func @transform_3(%arg0: i32, %arg1: i32) -> (i32, i32) {
    %c0_i32 = arith.constant 0 : i32
    %c0_i32_0 = arith.constant 0 : i32
    %c0_i32_1 = arith.constant 0 : i32
    return %c0_i32, %c0_i32_0 : i32, i32
  }
  func.func @transform_4(%arg0: i32, %arg1: i32) -> (i32, i32, i32) {
    %c0_i32 = arith.constant 0 : i32
    %c0_i32_0 = arith.constant 0 : i32
    %c0_i32_1 = arith.constant 0 : i32
    return %arg0, %c0_i32, %c0_i32_0 : i32, i32, i32
  }
  func.func @transform_5(%arg0: i32, %arg1: i32) -> (i32, i32, i32) {
    %c0_i32 = arith.constant 0 : i32
    %c0_i32_0 = arith.constant 0 : i32
    return %arg0, %c0_i32, %arg1 : i32, i32, i32
  }
}

</mosaic_0001>

<bundles_post_ra>
// kernel: exposure_decoding.1
= control target key start
LH: loop header
LB: loop body
LE: loop exit
PB: predicated region body
PF: predicated region fallthrough
CT: control target
= control target key end

     0   :  { %s822_s18 = smov 0   ;;  %s824_s19 = smov 0   ;;  %s910_s0 = inlined_call_operand.vmem [shape: bf16[2,32,256], index: 0, kind: input, shape index: {}]   ;;  %s911_s1 = inlined_call_operand.vmem [shape: bf16[2,32,1], index: 1, kind: input, shape index: {}]   ;;  %s912_s2 = inlined_call_operand.vmem [shape: bf16[2,32,32], index: 2, kind: input, shape index: {}]   ;;  %s913_s3 = inlined_call_operand.vmem [shape: bf16[3,32], index: 3, kind: input, shape index: {}]   ;;  %s914_s4 = inlined_call_operand.vmem [shape: f32[2,3,1], index: 4, kind: input, shape index: {}]   ;;  %s915_s5 = inlined_call_operand.vmem [shape: f32[2,3,256], index: 5, kind: output, shape index: {}]  }
   0x1   :  { %s826_s20 = smov 0  }
   0x2 LB: > { %s27_s21 = sadd.s32 1, %s784_s19  ;;  %p690_p0 = scmp.ge.s32.totalorder %s788_s20, 1  ;;  %s788_s20 = sphi %s826_s20, %s15_s20   ;;  %s784_s19 = sphi %s824_s19, %s917_s19   ;;  %s780_s18 = sphi %s822_s18, %s916_s18  }
   0x3   : > { %p29_p1 = scmp.ge.s32.totalorder %s27_s21, 2  ;;  %p227_p2 = scmp.lt.s32.totalorder %s788_s20, 3 }
   0x5   : > { %s919_s21 = smov (%p29_p1, %s27_s21), 0  ;;  %p228_p3 = pnand %p690_p0, %p227_p2 }
   0x6   : > { %p273_p4 = scmp.lt.s32.totalorder (!%p228_p3), %s780_s18, 1 }
   0x7   : > { %231 = sbr.rel (%p228_p3) target bundleno = 622 (0x26e), region = 40 }
   0xc   : > { %v790_v0 = vmov 0   ;;  %s921_s18 = smov (!%p273_p4, %s780_s18), 1  ;;  %v791_v5 = vmov 839922192   ;;  %v733_v44 = vld [vmem:[%s912_s2] sm:$0xff]  ;;  %vm384_vm0 = vcmask 261120  }
   0xd   : > { %764 = vset.pattern.permute.xlu1 %v790_v0  ;;  %763 = vset.pattern.permute.xlu0 %v790_v0  ;;  %s731_s22 = sshll.u32 %s921_s18, 4  ;;  %v316_v6 = vunpack.c.l.s4 %v791_v5  ;;  %s730_s26 = sshll.u32 %s921_s18, 5  ;;  %v734_v45 = vld [vmem:[%s912_s2 + $0x8] sm:$0xff]  ;;  %vm571_vm1 = vcmask 1043456  }
   0xe   : > { %765 = vset.pattern.permute.xlu2 %v790_v0  ;;  %s286_s25 = scalar_lea.vmem %s911_s1, %s731_s22  ;;  %s280_s29 = scalar_lea.vmem %s910_s0, %s730_s26 }
   0xf   : > { %v308_v1 = vld [vmem:[%s286_s25 + $0x8] sm:$0xf]  ;;  %v306_v2 = vld [vmem:[%s286_s25] sm:$0xf]  ;;  %v309_v3 = vld [vmem:[%s286_s25 + $0xc] sm:$0xf]  ;;  %v317_v9 = vunpack.c.0.s8 %v316_v6 }
  0x10   : > { %330 = vperm.xlu0 %763, %v308_v1   ;;  %312 = vperm.xlu1 %764, %v306_v2   ;;  %v307_v4 = vld [vmem:[%s286_s25 + $0x4] sm:$0xf]  ;;  %v304_v11 = vld [vmem:[%s280_s29 + $0x10] sm:$0xff]  ;;  %v305_v12 = vld [vmem:[%s280_s29 + $0x18] sm:$0xff]  ;;  %s695_s13 = sshll.u32 %s921_s18, 2  ;;  %s732_s23 = sshll.u32 %s921_s18, 3 }
  0x11   : > { %v350_v16 = vunpack.c.l.bf16 %v304_v11  ;;  %v352_v17 = vunpack.c.l.bf16 %v305_v12  ;;  %v351_v18 = vunpack.c.h.bf16 %v304_v11  ;;  %v303_v19 = vld [vmem:[%s280_s29 + $0x8] sm:$0xff]  ;;  %v353_v23 = vunpack.c.h.bf16 %v305_v12  ;;  %v302_v24 = vld [vmem:[%s280_s29] sm:$0xff]  ;;  %s290_s16 = scalar_lea.vmem %s914_s4, %s695_s13  ;;  %s299_s26 = scalar_lea.vmem %s915_s5, %s732_s23 }
  0x12   : > { %v348_v27 = vunpack.c.l.bf16 %v303_v19  ;;  %v349_v28 = vunpack.c.h.bf16 %v303_v19  ;;  %v346_v30 = vunpack.c.l.bf16 %v302_v24  ;;  %v347_v31 = vunpack.c.h.bf16 %v302_v24 }
  0x18   : > { %339 = vperm.xlu0 %763, %v309_v3   ;;  %321 = vperm.xlu1 %764, %v307_v4  }
  0x82   : > { %v331_v7 = vpop.permute.xlu0 %330  ;;  %v313_v8 = vpop.permute.xlu1 %312 }
  0x83   : > { %v336_v10 = vperm.slane %v331_v7, %v317_v9  ;;  %v318_v13 = vperm.slane %v313_v8, %v317_v9 }
  0x85   : > { %v850_v20 = vunpack.c.l.bf16 %v336_v10  ;;  %v854_v29 = vunpack.c.l.bf16 %v318_v13 }
  0x87   : > { %v362_v32 = vadd.f32 %v850_v20, %v350_v16  ;;  %v363_v34 = vadd.f32 %v850_v20, %v351_v18  ;;  %v358_v40 = vadd.f32 %v854_v29, %v346_v30  ;;  %v359_v41 = vadd.f32 %v854_v29, %v347_v31 }
  0x8a   : > { %v340_v14 = vpop.permute.xlu0 %339  ;;  %v322_v15 = vpop.permute.xlu1 %321 }
  0x8b   : > { %v345_v21 = vperm.slane %v340_v14, %v317_v9  ;;  %v327_v22 = vperm.slane %v322_v15, %v317_v9 }
  0x8d   : > { %v357_v25 = vunpack.c.l.bf16 %v345_v21  ;;  %v852_v26 = vunpack.c.l.bf16 %v327_v22 }
  0x8f   : > { %v364_v33 = vadd.f32 %v357_v25, %v352_v17  ;;  %v365_v35 = vadd.f32 %v357_v25, %v353_v23  ;;  %v360_v38 = vadd.f32 %v852_v26, %v348_v27  ;;  %v361_v39 = vadd.f32 %v852_v26, %v349_v28  ;;  %v736_v23 = vld [vmem:[%s912_s2 + $0x18] sm:$0xff] }
  0x91   : > { %v368_v36 = vpack.c.bf16 %v364_v33, %v362_v32  ;;  %v369_v37 = vpack.c.bf16 %v365_v35, %v363_v34  ;;  %v366_v42 = vpack.c.bf16 %v360_v38, %v358_v40  ;;  %v367_v43 = vpack.c.bf16 %v361_v39, %v359_v41 }
  0x93   : > { %397 = vmatpush.bf16.msra.mxu0 %v368_v36  ;;  %416 = vmatpush.bf16.msra.mxu1 %v369_v37 }
  0x97   : > { %398 = vmatpush.bf16.msra.mxu0 %v366_v42  ;;  %417 = vmatpush.bf16.msra.mxu1 %v367_v43 }
  0x9a   : > { %706 = vmatmul.msk.bf16.vlgmr.msra.gmra.mxu0 %vm384_vm0, %v733_v44  ;;  %708 = vmatmul.msk.bf16.vlgmr.msra.gmra.mxu1 %vm384_vm0, %v733_v44 }
  0xaa   : > { %707 = vmatmul.msk.bf16.gmra.mxu0 %vm384_vm0, %v734_v45  ;;  %709 = vmatmul.msk.bf16.gmra.mxu1 %vm384_vm0, %v734_v45  ;;  %v532_v45 = vld [vmem:[%s913_s3] sm:$0x3] }
 0x117   : > { %v400_v46 = vpop.f32.mrf.mxu0  ;;  %v419_v47 = vpop.f32.mrf.mxu1 }
 0x118   : > { %v429_v56 = vmax.f32 %v400_v46, 0.0  ;;  %v430_v57 = vmax.f32 %v419_v47, 0.0 }
 0x11a   : > { %v437_v0 = vpack.c.bf16 %v430_v57, %v429_v56 }
 0x11c   : > { %v441_v8 = vunpack.c.l.bf16 %v437_v0  ;;  %v442_v9 = vunpack.c.h.bf16 %v437_v0 }
 0x11e   : > { %v449_v18 = vadd.f32 %v441_v8, %v854_v29  ;;  %v450_v19 = vadd.f32 %v442_v9, %v854_v29 }
 0x11f   : > { %v402_v48 = vpop.f32.mrf.mxu0  ;;  %v421_v49 = vpop.f32.mrf.mxu1 }
 0x120   : > { %v431_v54 = vmax.f32 %v402_v48, 0.0  ;;  %v432_v55 = vmax.f32 %v421_v49, 0.0 }
 0x122   : > { %v438_v61 = vpack.c.bf16 %v432_v55, %v431_v54 }
 0x124   : > { %v443_v4 = vunpack.c.l.bf16 %v438_v61  ;;  %v444_v5 = vunpack.c.h.bf16 %v438_v61 }
 0x126   : > { %v451_v16 = vadd.f32 %v443_v4, %v852_v26  ;;  %v452_v17 = vadd.f32 %v444_v5, %v852_v26  ;;  %v533_v26 = vld [vmem:[%s290_s16] sm:$0x7] }
 0x127   : > { %v405_v50 = vpop.f32.mrf.mxu0  ;;  %v424_v51 = vpop.f32.mrf.mxu1  ;;  %536 = vperm.xlu2 %765, %v533_v26  }
 0x128   : > { %v433_v52 = vmax.f32 %v405_v50, 0.0  ;;  %v434_v53 = vmax.f32 %v424_v51, 0.0  ;;  %v457_v21 = vpack.c.bf16 %v451_v16, %v449_v18  ;;  %v458_v22 = vpack.c.bf16 %v452_v17, %v450_v19 }
 0x12a   : > { %v439_v58 = vpack.c.bf16 %v434_v53, %v433_v52 }
 0x12c   : > { %v445_v2 = vunpack.c.l.bf16 %v439_v58  ;;  %v446_v3 = vunpack.c.h.bf16 %v439_v58 }
 0x12e   : > { %v453_v10 = vadd.f32 %v445_v2, %v850_v20  ;;  %v454_v12 = vadd.f32 %v446_v3, %v850_v20  ;;  %v735_v20 = vld [vmem:[%s912_s2 + $0x10] sm:$0xff] }
 0x12f   : > { %v407_v59 = vpop.f32.mrf.mxu0  ;;  %v426_v60 = vpop.f32.mrf.mxu1 }
 0x130   : > { %v435_v62 = vmax.f32 %v407_v59, 0.0  ;;  %v436_v63 = vmax.f32 %v426_v60, 0.0 }
 0x132   : > { %v440_v1 = vpack.c.bf16 %v436_v63, %v435_v62 }
 0x134   : > { %v447_v6 = vunpack.c.l.bf16 %v440_v1  ;;  %v448_v7 = vunpack.c.h.bf16 %v440_v1 }
 0x136   : > { %v455_v11 = vadd.f32 %v447_v6, %v357_v25  ;;  %v456_v13 = vadd.f32 %v448_v7, %v357_v25 }
 0x138   : > { %v459_v14 = vpack.c.bf16 %v455_v11, %v453_v10  ;;  %v460_v15 = vpack.c.bf16 %v456_v13, %v454_v12 }
 0x13a   : > { %488 = vmatpush.bf16.msra.mxu2 %v459_v14  ;;  %507 = vmatpush.bf16.msra.mxu3 %v460_v15 }
 0x13e   : > { %489 = vmatpush.bf16.msra.mxu2 %v457_v21  ;;  %508 = vmatpush.bf16.msra.mxu3 %v458_v22 }
 0x141   : > { %722 = vmatmul.msk.bf16.vlgmr.msra.gmra.mxu2 %vm384_vm0, %v735_v20  ;;  %724 = vmatmul.msk.bf16.vlgmr.msra.gmra.mxu3 %vm384_vm0, %v735_v20 }
 0x151   : > { %723 = vmatmul.msk.bf16.gmra.mxu2 %vm384_vm0, %v736_v23  ;;  %725 = vmatmul.msk.bf16.gmra.mxu3 %vm384_vm0, %v736_v23 }
 0x181   : > { %v537_v46 = vpop.permute.xlu2 %536 }
 0x1c4   : > { %v491_v24 = vpop.f32.mrf.mxu2  ;;  %v510_v25 = vpop.f32.mrf.mxu3 }
 0x1c5   : > { %v520_v41 = vmax.f32 %v491_v24, 0.0  ;;  %v521_v42 = vmax.f32 %v510_v25, 0.0 }
 0x1cc   : > { %v493_v27 = vpop.f32.mrf.mxu2  ;;  %v512_v28 = vpop.f32.mrf.mxu3 }
 0x1cd   : > { %v522_v37 = vmax.f32 %v493_v27, 0.0  ;;  %v523_v38 = vmax.f32 %v512_v28, 0.0 }
 0x1cf   : > { %v528_v43 = vpack.c.bf16 %v522_v37, %v520_v41  ;;  %v529_v44 = vpack.c.bf16 %v523_v38, %v521_v42 }
 0x1d4   : > { %v496_v29 = vpop.f32.mrf.mxu2  ;;  %v515_v30 = vpop.f32.mrf.mxu3 }
 0x1d5   : > { %v524_v33 = vmax.f32 %v496_v29, 0.0  ;;  %v525_v34 = vmax.f32 %v515_v30, 0.0 }
 0x1dc   : > { %v498_v31 = vpop.f32.mrf.mxu2  ;;  %v517_v32 = vpop.f32.mrf.mxu3 }
 0x1dd   : > { %v526_v35 = vmax.f32 %v498_v31, 0.0  ;;  %v527_v36 = vmax.f32 %v517_v32, 0.0 }
 0x1df   : > { %v530_v39 = vpack.c.bf16 %v526_v35, %v524_v33  ;;  %v531_v40 = vpack.c.bf16 %v527_v36, %v525_v34 }
 0x1e1   : > { %548 = vmatpush.bf16.msrb.mxu0 %v530_v39  ;;  %561 = vmatpush.bf16.msrb.mxu1 %v531_v40 }
 0x1e5   : > { %549 = vmatpush.bf16.msrb.mxu0 %v528_v43  ;;  %562 = vmatpush.bf16.msrb.mxu1 %v529_v44 }
 0x1e8   : > { %726 = vmatmul.msk.bf16.vlgmr.msrb.gmra.mxu0 %vm384_vm0, %v532_v45  ;;  %727 = vmatmul.msk.bf16.vlgmr.msrb.gmra.mxu1 %vm384_vm0, %v532_v45 }
 0x265   : > { %v551_v47 = vpop.f32.mrf.mxu0  ;;  %v564_v48 = vpop.f32.mrf.mxu1 }
 0x266   : > { %v565_v49 = vadd.f32 %v564_v48, %v537_v46  ;;  %v552_v50 = vadd.f32 %v551_v47, %v537_v46 }
 0x268   : > { %v570_v51 = vrot.slane %v565_v49, 4 }
 0x26a   : > { %v572_v52 = vsel %vm571_vm1, %v552_v50, %v570_v51 }
 0x26b   : > { %574 = vst [vmem:[%s299_s26] sm:$0x77] %v572_v52 }
 0x26d   : > { %v553_v53 = vpop.f32.mrf.mxu0  ;;  %v566_v54 = vpop.f32.mrf.mxu1 }
 0x26e PF: > { %s15_s20 = sadd.s32 1, %s788_s20   ;;  %s916_s18 = smov %s784_s19 }
 0x26f   : > { %p12_p5 = scmp.ge.s32.totalorder %s15_s20, 4   ;;  %s917_s19 = smov %s919_s21 }
 0x271   :  { %14 = sbr.rel (!%p12_p5) target bundleno = 2 (0x2), region = 77 }

</bundles_post_ra>
